<compile_context>
chip_gen: v5e
topology: v5e:2x2
jax: 0.10.0
libtpu: 0.0.40
codegen_flags: <defaults>
</compile_context>

<pallas_src>
import functools

import jax
import jax.numpy as jnp
from jax.experimental import pallas as pl
from jax.experimental.pallas import tpu as pltpu


def _round_up(x, m):
    return ((x + m - 1) // m) * m


def _fused_predictor_kernel(x_ref, w_ref, b_ref, o_ref):
    # (TM, Dp) @ (Dp, OUTp) on the MXU with f32 accumulation; add bias once.
    acc = jnp.dot(x_ref[...], w_ref[...], preferred_element_type=jnp.float32)
    o_ref[...] = (acc + b_ref[...]).astype(o_ref.dtype)


def prepare_fastrcnn_params(w_cls, b_cls, w_bbox, b_bbox,
                            compute_dtype=jnp.bfloat16):
    """One-time parameter prep (do NOT call per forward).

    PyTorch convention in: w_cls (C, D), b_cls (C,), w_bbox (4C, D), b_bbox (4C,).
    Returns:
      w_fused: (D_pad, OUT_pad) compute_dtype, fused + transposed + zero-padded.
      b_fused: (1, OUT_pad) float32.
    """
    num_classes, d = w_cls.shape
    out = num_classes + w_bbox.shape[0]          # 5 * num_classes
    d_pad = _round_up(d, 128)
    out_pad = _round_up(out, 128)

    w_fused = jnp.concatenate([w_cls, w_bbox], axis=0).T.astype(jnp.float32)
    w_fused = jnp.pad(w_fused, ((0, d_pad - d), (0, out_pad - out)))
    w_fused = w_fused.astype(compute_dtype)

    b_fused = jnp.concatenate([b_cls, b_bbox]).astype(jnp.float32)
    b_fused = jnp.pad(b_fused, (0, out_pad - out)).reshape(1, out_pad)
    return w_fused, b_fused


@functools.partial(jax.jit, static_argnames=("num_classes", "tm"))
def fastrcnn_predictor(x, w_fused, b_fused, *, num_classes, tm=256):
    """Forward pass of FastRCNNPredictor.

    x: (N, D) or (N, C, H, W); (w_fused, b_fused) from prepare_fastrcnn_params.
    Returns (scores (N, C), bbox_deltas (N, 4C)) in x's dtype.
    """
    out_dtype = x.dtype
    if x.ndim == 4:
        x = x.reshape(x.shape[0], -1)            # == torch.flatten(x, start_dim=1)
    n, d = x.shape
    d_pad, out_pad = w_fused.shape
    compute_dtype = w_fused.dtype

    # Row tile: multiple of 16 (bf16 sublane packing), clamped for tiny batches.
    tm = min(_round_up(tm, 16), _round_up(n, 16))
    n_pad = _round_up(n, tm)

    x_p = jnp.pad(x.astype(compute_dtype), ((0, n_pad - n), (0, d_pad - d)))

    fused = pl.pallas_call(
        _fused_predictor_kernel,
        out_shape=jax.ShapeDtypeStruct((n_pad, out_pad), jnp.float32),
        grid=(n_pad // tm,),
        in_specs=[
            pl.BlockSpec((tm, d_pad), lambda i: (i, 0)),       # x tile (pipelined)
            pl.BlockSpec((d_pad, out_pad), lambda i: (0, 0)),  # fused weights (resident)
            pl.BlockSpec((1, out_pad), lambda i: (0, 0)),      # fused bias (resident)
        ],
        out_specs=pl.BlockSpec((tm, out_pad), lambda i: (i, 0)),
        compiler_params=pltpu.CompilerParams(
            dimension_semantics=("parallel",)),  # shard rows across TCs (v7x)
    )(x_p, w_fused, b_fused)
    # NOTE: for very large D (raw ROI features, D ~ 12k) on v7x (64 MiB VMEM),
    # single-buffer the resident weight spec (pipeline_mode=pl.Buffered(1)) or
    # add a K-reduction grid axis with an f32 VMEM accumulator.

    fused = fused[:n].astype(out_dtype)
    scores = fused[:, :num_classes]
    bbox_deltas = fused[:, num_classes:num_classes * 5]
    return scores, bbox_deltas


def _init_params(key, in_channels, num_classes, dtype=jnp.float32):
    """Deterministic init mimicking nn.Linear default (uniform +-1/sqrt(fan_in))."""
    k1, k2, k3, k4 = jax.random.split(key, 4)
    bound = 1.0 / jnp.sqrt(jnp.array(in_channels, dtype))
    w_cls = jax.random.uniform(k1, (num_classes, in_channels), dtype,
                               minval=-bound, maxval=bound)
    b_cls = jax.random.uniform(k2, (num_classes,), dtype,
                               minval=-bound, maxval=bound)
    w_bbox = jax.random.uniform(k3, (num_classes * 4, in_channels), dtype,
                                minval=-bound, maxval=bound)
    b_bbox = jax.random.uniform(k4, (num_classes * 4,), dtype,
                                minval=-bound, maxval=bound)
    return w_cls, b_cls, w_bbox, b_bbox


if __name__ == "__main__":
    key = jax.random.PRNGKey(0)
    k_x, k_p = jax.random.split(key)

    # Small shapes consistent with the module: batch=8 ROI features of shape
    # (in_channels, 1, 1) -> flattened dim = in_channels = 32.
    batch = 8
    in_channels = 32
    num_classes = 8

    x = jax.random.normal(k_x, (batch, in_channels, 1, 1), jnp.float32)
    w_cls, b_cls, w_bbox, b_bbox = _init_params(k_p, in_channels, num_classes)

    # One-time parameter prep (fuse heads, transpose, pad, cast to bf16).
    w_fused, b_fused = prepare_fastrcnn_params(w_cls, b_cls, w_bbox, b_bbox)

    scores, bbox_deltas = fastrcnn_predictor(
        x, w_fused, b_fused, num_classes=num_classes)
    jax.block_until_ready((scores, bbox_deltas))

    # Reference check in plain JAX (same math as the PyTorch module), f32.
    x_flat = x.reshape(batch, -1)
    ref_scores = x_flat @ w_cls.T + b_cls
    ref_bbox = x_flat @ w_bbox.T + b_bbox

    assert scores.shape == (batch, num_classes)
    assert bbox_deltas.shape == (batch, num_classes * 4)
    # bf16 inputs / weights with f32 accumulation -> loosened tolerance.
    assert jnp.allclose(scores, ref_scores, atol=2e-2, rtol=2e-2)
    assert jnp.allclose(bbox_deltas, ref_bbox, atol=2e-2, rtol=2e-2)

    print("KERNEL_OK")
</pallas_src>

<mosaic_0001>
module attributes {stable_mosaic.version = 11 : i64} {
  func.func @_fused_predictor_kernel(%arg0: i32, %arg1: memref<16x128xbf16, #tpu.memory_space<vmem>>, %arg2: memref<128x128xbf16, #tpu.memory_space<vmem>>, %arg3: memref<1x128xf32, #tpu.memory_space<vmem>>, %arg4: memref<16x128xf32, #tpu.memory_space<vmem>>) attributes {dimension_semantics = [#tpu.dimension_semantics<parallel>], iteration_bounds = array<i64: 1>, scalar_prefetch = 0 : i64, scratch_operands = 0 : i64, tpu.core_type = #tpu.core_type<tc>, window_params = [{transform_indices = @transform_0, window_bounds = array<i64: 16, 128>}, {pipeline_mode = #tpu.pipeline_mode<synchronous>, transform_indices = @transform_1, window_bounds = array<i64: 128, 128>}, {pipeline_mode = #tpu.pipeline_mode<synchronous>, transform_indices = @transform_2, window_bounds = array<i64: 1, 128>}, {transform_indices = @transform_3, window_bounds = array<i64: 16, 128>}]} {
    %c0 = arith.constant 0 : index
    %c0_0 = arith.constant 0 : index
    %0 = vector.load %arg1[%c0, %c0_0] : memref<16x128xbf16, #tpu.memory_space<vmem>>, vector<16x128xbf16>
    %c0_1 = arith.constant 0 : index
    %c0_2 = arith.constant 0 : index
    %1 = vector.load %arg2[%c0_1, %c0_2] : memref<128x128xbf16, #tpu.memory_space<vmem>>, vector<128x128xbf16>
    %cst = arith.constant dense<0.000000e+00> : vector<16x128xf32>
    %2 = tpu.matmul %0, %1, %cst {dimension_numbers = #tpu.dot_dimension_numbers<[1], [0], [0], [1], [0, 0, 1, 1], [], []>} : vector<16x128xbf16>, vector<128x128xbf16>, vector<16x128xf32> -> vector<16x128xf32>
    %c0_3 = arith.constant 0 : index
    %c0_4 = arith.constant 0 : index
    %3 = vector.load %arg3[%c0_3, %c0_4] : memref<1x128xf32, #tpu.memory_space<vmem>>, vector<1x128xf32>
    %4 = vector.broadcast %3 : vector<1x128xf32> to vector<16x128xf32>
    %5 = arith.addf %2, %4 : vector<16x128xf32>
    %c0_5 = arith.constant 0 : index
    %c0_6 = arith.constant 0 : index
    %6 = vector.load %arg4[%c0_5, %c0_6] : memref<16x128xf32, #tpu.memory_space<vmem>>, vector<16x128xf32>
    tpu.vector_store %arg4[%c0_5, %c0_6], %5 {strides = array<i32>} : memref<16x128xf32, #tpu.memory_space<vmem>>, vector<16x128xf32>,
    return
  }
  func.func @transform_0(%arg0: i32) -> (i32, i32) {
    %c0_i32 = arith.constant 0 : i32
    %c0_i32_0 = arith.constant 0 : i32
    return %arg0, %c0_i32 : i32, i32
  }
  func.func @transform_1(%arg0: i32) -> (i32, i32) {
    %c0_i32 = arith.constant 0 : i32
    %c0_i32_0 = arith.constant 0 : i32
    %c0_i32_1 = arith.constant 0 : i32
    return %c0_i32, %c0_i32_0 : i32, i32
  }
  func.func @transform_2(%arg0: i32) -> (i32, i32) {
    %c0_i32 = arith.constant 0 : i32
    %c0_i32_0 = arith.constant 0 : i32
    %c0_i32_1 = arith.constant 0 : i32
    return %c0_i32, %c0_i32_0 : i32, i32
  }
  func.func @transform_3(%arg0: i32) -> (i32, i32) {
    %c0_i32 = arith.constant 0 : i32
    %c0_i32_0 = arith.constant 0 : i32
    return %arg0, %c0_i32 : i32, i32
  }
}

</mosaic_0001>

<bundles_post_ra>
// kernel: fastrcnn_predictor.1
= control target key start
LH: loop header
LB: loop body
LE: loop exit
PB: predicated region body
PF: predicated region fallthrough
CT: control target
= control target key end

     0   :  { %8 = vsyncpa [#allocation3], 0  ;;  %s202_s15 = smov [#allocation2]   ;;  %s203_s17 = smov 64   ;;  %s240_s0 = inlined_call_operand.vmem [shape: bf16[16,128], index: 0, kind: input, shape index: {}]   ;;  %s241_s1 = inlined_call_operand.hbm [shape: bf16[128,128], index: 1, kind: input, shape index: {}]   ;;  %s242_s2 = inlined_call_operand.vmem [shape: f32[1,128], index: 2, kind: input, shape index: {}]   ;;  %s243_s3 = inlined_call_operand.vmem [shape: f32[16,128], index: 3, kind: output, shape index: {}]  }
   0x1   :  { %s15_s14 = sshll.u32 %s241_s1, 4  ;;  %s17_s16 = sshll.u32 %s202_s15, 4  ;;  %s16_s14 = int_to_ptr.hbm [resolvable:$true] %s15_s14  ;;  %s18_s16 = int_to_ptr.vmem [resolvable:$true] %s17_s16 }
   0x2   :  { %s204_s18 = smov 4  }
   0x3   :  { %23 = dma.hbm_to_vmem [thread:$0]  %s16_s14, 1024, %s18_s16, [#allocation3], %s203_s17, %s203_s17, %s204_s18  }
   0x4   :  { %200 = dma.done.wait [#allocation3], 1024  }
   0x5   :  { %201 = vsyncadd [#allocation3], 4294966272  ;;  %v171_v0 = vld [vmem:[#allocation2 + $0x38] sm:$0xff]  ;;  %v170_v1 = vld [vmem:[#allocation2 + $0x30] sm:$0xff] }
   0x6   :  { %106 = vmatpush.bf16.msra.mxu0 %v171_v0  ;;  %v169_v2 = vld [vmem:[#allocation2 + $0x28] sm:$0xff]  ;;  %v168_v3 = vld [vmem:[#allocation2 + $0x20] sm:$0xff]  ;;  %v167_v4 = vld [vmem:[#allocation2 + $0x18] sm:$0xff] }
   0x7   :  { %v166_v5 = vld [vmem:[#allocation2 + $0x10] sm:$0xff]  ;;  %v165_v6 = vld [vmem:[#allocation2 + $0x8] sm:$0xff]  ;;  %v164_v7 = vld [vmem:[#allocation2] sm:$0xff] }
   0x8   :  { %v163_v8 = vld [vmem:[%s240_s0] sm:$0xff] }
   0x9   :  { %v175_v9 = vld [vmem:[%s242_s2] ss:$0 sm:$0xff] }
   0xa   :  { %107 = vmatpush.bf16.msra.mxu0 %v170_v1 }
   0xe   :  { %108 = vmatpush.bf16.msra.mxu0 %v169_v2 }
  0x12   :  { %109 = vmatpush.bf16.msra.mxu0 %v168_v3 }
  0x16   :  { %110 = vmatpush.bf16.msra.mxu0 %v167_v4 }
  0x1a   :  { %111 = vmatpush.bf16.msra.mxu0 %v166_v5 }
  0x1e   :  { %112 = vmatpush.bf16.msra.mxu0 %v165_v6 }
  0x22   :  { %113 = vmatpush.bf16.msra.mxu0 %v164_v7 }
  0x25   :  { %114 = vmatmul.bf16.vlgmr.msra.gmra.mxu0 %v163_v8 }
  0xa2   :  { %v115_v10 = vpop.f32.mrf.mxu0 }
  0xa3   :  { %v116_v11 = vadd.f32 %v175_v9, %v115_v10 }
  0xa5   :  { %120 = vst [vmem:[%s243_s3] sm:$0xff] %v116_v11 }
  0xaa   :  { %v117_v12 = vpop.f32.mrf.mxu0 }
  0xab   :  { %v118_v13 = vadd.f32 %v175_v9, %v117_v12 }
  0xad   :  { %121 = vst [vmem:[%s243_s3 + $0x8] sm:$0xff] %v118_v13 }
  0xae   :  { %126 = vsyncpa [#allocation3], 1 }

</bundles_post_ra>
